<compile_context>
chip_gen: v6e
topology: v6e:2x2x1
jax: 0.10.0
libtpu: 0.0.40
codegen_flags: <defaults>
</compile_context>

<pallas_src>
import jax
import jax.numpy as jnp
from jax.experimental import pallas as pl
from jax.experimental.pallas import tpu as pltpu

STATE_SPACE = 4     # CartPole-v1 observation_space.shape[0]
ACTION_SPACE = 2    # CartPole-v1 action_space.n
NUM_HIDDEN = 128


# ---------------------------------------------------------------------------
# Kernel
# ---------------------------------------------------------------------------
def policy_kernel(w_ref, x_ref, out_ref):
    # w_ref:   (8,)    SMEM  folded weight (W2 @ W1), row-major: w[a*4 + s]
    # x_ref:   (4, TB) VMEM  state tile, batch on the lane axis
    # out_ref: (2, TB) VMEM  log-probabilities, batch on the lane axis
    x0 = x_ref[0:1, :]
    x1 = x_ref[1:2, :]
    x2 = x_ref[2:3, :]
    x3 = x_ref[3:4, :]

    # 4 -> 2 contraction on the VPU: scalar-broadcast multiplies + adds over
    # full-lane vregs (the (TB,4)x(4,2) matmul would waste >99% of the MXU).
    l0 = w_ref[0] * x0 + w_ref[1] * x1 + w_ref[2] * x2 + w_ref[3] * x3
    l1 = w_ref[4] * x0 + w_ref[5] * x1 + w_ref[6] * x2 + w_ref[7] * x3

    # 2-class log-softmax in closed form (numerically stable softplus):
    #   logp0 = -softplus(l1 - l0) = d - softplus(d),  logp1 = -softplus(d)
    d = l0 - l1                                                       # (1, TB)
    sp = jnp.maximum(d, 0.0) + jnp.log(1.0 + jnp.exp(-jnp.abs(d)))    # softplus(d)
    out_ref[0:1, :] = (d - sp).astype(out_ref.dtype)                  # logp(action 0)
    out_ref[1:2, :] = (-sp).astype(out_ref.dtype)                     # logp(action 1)


# ---------------------------------------------------------------------------
# Parameter prep: call ONCE per weight update, not per forward.
# ---------------------------------------------------------------------------
def fold_policy_params(w1, w2):
    """w1: (H, S), w2: (A, H) in PyTorch nn.Linear layout (out_features, in_features).

    Returns the folded weight W2 @ W1 flattened to (A*S,) row-major, consumed
    by the kernel from SMEM.  Exact because the module's forward has no
    nonlinearity between l1 and l2 (up to f32 rounding)."""
    return jnp.reshape(w2 @ w1, (-1,))            # (2, 4) -> (8,)


# ---------------------------------------------------------------------------
# Forward (hot path): transposed, lane-dense core + module-layout wrapper
# ---------------------------------------------------------------------------
def policy_forward_t(x_t, wc_flat, *, block_b=64 * 1024):
    """x_t: (S, B) f32 states with batch on the last (lane) axis.
    Returns (A, B) log-probs."""
    S, B = x_t.shape
    A = ACTION_SPACE
    assert S == STATE_SPACE, "kernel is specialized for CartPole's 4-d state"

    if B <= 256:
        tm = B                                    # single block; lane dim == full dim
    else:
        # >= 2 blocks so the "parallel" batch axis feeds both v7x TensorCores;
        # each block a multiple of 128 lanes, capped by block_b for VMEM.
        half = ((pl.cdiv(B, 2) + 127) // 128) * 128
        tm = min(block_b, half)
    n_blocks = pl.cdiv(B, tm)                     # ragged tail handled by Pallas masking

    return pl.pallas_call(
        policy_kernel,
        out_shape=jax.ShapeDtypeStruct((A, B), jnp.float32),
        grid=(n_blocks,),
        in_specs=[
            pl.BlockSpec(memory_space=pltpu.MemorySpace.SMEM),   # 8 folded weights in SMEM
            pl.BlockSpec((S, tm), lambda i: (0, i)),             # lane-dense state tile
        ],
        out_specs=pl.BlockSpec((A, tm), lambda i: (0, i)),       # lane-dense output tile
        compiler_params=pltpu.CompilerParams(
            dimension_semantics=("parallel",),                   # megacore-shard batch on v7x
        ),
    )(wc_flat, x_t)


def policy_forward(x, wc_flat, *, block_b=64 * 1024):
    """x: (B, S) f32 states (module layout).  Returns (B, A) log-probs.

    The transposes here are layout plumbing to match the PyTorch interface; a
    real rollout pipeline should produce/consume states batch-on-lanes and call
    policy_forward_t directly (optionally with bf16 states) to avoid them.
    """
    out_t = policy_forward_t(jnp.transpose(x), wc_flat, block_b=block_b)
    return jnp.transpose(out_t)


# ---------------------------------------------------------------------------
# Reference + demo
# ---------------------------------------------------------------------------
def _init_linear_weight(key, out_features, in_features):
    # Stand-in for PyTorch's default init: U(-1/sqrt(fan_in), 1/sqrt(fan_in)).
    bound = 1.0 / jnp.sqrt(jnp.float32(in_features))
    return jax.random.uniform(
        key, (out_features, in_features), jnp.float32, minval=-bound, maxval=bound
    )


def _reference_forward(x, w1, w2):
    logits = (x @ w1.T) @ w2.T
    return jax.nn.log_softmax(logits, axis=-1)


if __name__ == "__main__":
    key = jax.random.PRNGKey(0)
    k_x, k_w1, k_w2, k_x2 = jax.random.split(key, 4)

    w1 = _init_linear_weight(k_w1, NUM_HIDDEN, STATE_SPACE)     # l1.weight: (128, 4)
    w2 = _init_linear_weight(k_w2, ACTION_SPACE, NUM_HIDDEN)    # l2.weight: (2, 128)
    wc_flat = fold_policy_params(w1, w2)                        # (8,)

    # Small batch of CartPole states (single-block path).
    B = 8
    x = jax.random.normal(k_x, (B, STATE_SPACE), jnp.float32)
    out = jax.block_until_ready(policy_forward(x, wc_flat))
    ref = _reference_forward(x, w1, w2)
    assert out.shape == (B, ACTION_SPACE)
    assert jnp.allclose(out, ref, atol=2e-5, rtol=1e-5), "mismatch vs JAX reference (B=8)"
    assert jnp.allclose(jnp.sum(jnp.exp(out), axis=-1), 1.0, atol=1e-5)

    # Larger batch (multi-block path: 2 tiles of 256 lanes; exercises the grid
    # and the megacore 'parallel' split).
    B2 = 512
    x2 = jax.random.normal(k_x2, (B2, STATE_SPACE), jnp.float32)
    out2 = jax.block_until_ready(policy_forward(x2, wc_flat))
    ref2 = _reference_forward(x2, w1, w2)
    assert out2.shape == (B2, ACTION_SPACE)
    assert jnp.allclose(out2, ref2, atol=2e-5, rtol=1e-5), "mismatch vs JAX reference (B=512)"

    print("KERNEL_OK")
</pallas_src>

<mosaic_0001>
module attributes {stable_mosaic.version = 11 : i64} {
  func.func @policy_kernel(%arg0: i32, %arg1: memref<8xf32, #tpu.memory_space<smem>>, %arg2: memref<4x8xf32, #tpu.memory_space<vmem>>, %arg3: memref<2x8xf32, #tpu.memory_space<vmem>>) attributes {dimension_semantics = [#tpu.dimension_semantics<parallel>], iteration_bounds = array<i64: 1>, scalar_prefetch = 0 : i64, scratch_operands = 0 : i64, tpu.core_type = #tpu.core_type<tc>, window_params = [{transform_indices = @transform_0, window_bounds = array<i64: 8>}, {transform_indices = @transform_1, window_bounds = array<i64: 4, 8>}, {transform_indices = @transform_2, window_bounds = array<i64: 2, 8>}]} {
    %c0 = arith.constant 0 : index
    %c0_0 = arith.constant 0 : index
    %0 = vector.load %arg2[%c0, %c0_0] : memref<4x8xf32, #tpu.memory_space<vmem>>, vector<1x8xf32>
    %c1 = arith.constant 1 : index
    %c0_1 = arith.constant 0 : index
    %1 = vector.load %arg2[%c1, %c0_1] : memref<4x8xf32, #tpu.memory_space<vmem>>, vector<1x8xf32>
    %c2 = arith.constant 2 : index
    %c0_2 = arith.constant 0 : index
    %2 = vector.load %arg2[%c2, %c0_2] : memref<4x8xf32, #tpu.memory_space<vmem>>, vector<1x8xf32>
    %c3 = arith.constant 3 : index
    %c0_3 = arith.constant 0 : index
    %3 = vector.load %arg2[%c3, %c0_3] : memref<4x8xf32, #tpu.memory_space<vmem>>, vector<1x8xf32>
    %c0_4 = arith.constant 0 : index
    %4 = memref.load %arg1[%c0_4] : memref<8xf32, #tpu.memory_space<smem>>
    %5 = vector.broadcast %4 : f32 to vector<1x8xf32>
    %6 = arith.mulf %5, %0 : vector<1x8xf32>
    %c1_5 = arith.constant 1 : index
    %7 = memref.load %arg1[%c1_5] : memref<8xf32, #tpu.memory_space<smem>>
    %8 = vector.broadcast %7 : f32 to vector<1x8xf32>
    %9 = arith.mulf %8, %1 : vector<1x8xf32>
    %10 = arith.addf %6, %9 : vector<1x8xf32>
    %c2_6 = arith.constant 2 : index
    %11 = memref.load %arg1[%c2_6] : memref<8xf32, #tpu.memory_space<smem>>
    %12 = vector.broadcast %11 : f32 to vector<1x8xf32>
    %13 = arith.mulf %12, %2 : vector<1x8xf32>
    %14 = arith.addf %10, %13 : vector<1x8xf32>
    %c3_7 = arith.constant 3 : index
    %15 = memref.load %arg1[%c3_7] : memref<8xf32, #tpu.memory_space<smem>>
    %16 = vector.broadcast %15 : f32 to vector<1x8xf32>
    %17 = arith.mulf %16, %3 : vector<1x8xf32>
    %18 = arith.addf %14, %17 : vector<1x8xf32>
    %c4 = arith.constant 4 : index
    %19 = memref.load %arg1[%c4] : memref<8xf32, #tpu.memory_space<smem>>
    %20 = vector.broadcast %19 : f32 to vector<1x8xf32>
    %21 = arith.mulf %20, %0 : vector<1x8xf32>
    %c5 = arith.constant 5 : index
    %22 = memref.load %arg1[%c5] : memref<8xf32, #tpu.memory_space<smem>>
    %23 = vector.broadcast %22 : f32 to vector<1x8xf32>
    %24 = arith.mulf %23, %1 : vector<1x8xf32>
    %25 = arith.addf %21, %24 : vector<1x8xf32>
    %c6 = arith.constant 6 : index
    %26 = memref.load %arg1[%c6] : memref<8xf32, #tpu.memory_space<smem>>
    %27 = vector.broadcast %26 : f32 to vector<1x8xf32>
    %28 = arith.mulf %27, %2 : vector<1x8xf32>
    %29 = arith.addf %25, %28 : vector<1x8xf32>
    %c7 = arith.constant 7 : index
    %30 = memref.load %arg1[%c7] : memref<8xf32, #tpu.memory_space<smem>>
    %31 = vector.broadcast %30 : f32 to vector<1x8xf32>
    %32 = arith.mulf %31, %3 : vector<1x8xf32>
    %33 = arith.addf %29, %32 : vector<1x8xf32>
    %34 = arith.subf %18, %33 : vector<1x8xf32>
    %cst = arith.constant 0.000000e+00 : f32
    %35 = vector.broadcast %cst : f32 to vector<1x8xf32>
    %36 = arith.maximumf %34, %35 : vector<1x8xf32>
    %37 = math.absf %34 : vector<1x8xf32>
    %cst_8 = arith.constant 0.000000e+00 : f32
    %38 = vector.broadcast %cst_8 : f32 to vector<1x8xf32>
    %39 = arith.subf %38, %37 : vector<1x8xf32>
    %40 = math.exp %39 : vector<1x8xf32>
    %cst_9 = arith.constant 1.000000e+00 : f32
    %41 = vector.broadcast %cst_9 : f32 to vector<1x8xf32>
    %42 = arith.addf %41, %40 : vector<1x8xf32>
    %43 = math.log %42 : vector<1x8xf32>
    %44 = arith.addf %36, %43 : vector<1x8xf32>
    %45 = arith.subf %34, %44 : vector<1x8xf32>
    %c0_10 = arith.constant 0 : index
    %c0_11 = arith.constant 0 : index
    %46 = vector.load %arg3[%c0_10, %c0_11] : memref<2x8xf32, #tpu.memory_space<vmem>>, vector<1x8xf32>
    tpu.vector_store %arg3[%c0_10, %c0_11], %45 {strides = array<i32>} : memref<2x8xf32, #tpu.memory_space<vmem>>, vector<1x8xf32>,
    %cst_12 = arith.constant 0.000000e+00 : f32
    %47 = vector.broadcast %cst_12 : f32 to vector<1x8xf32>
    %48 = arith.subf %47, %44 : vector<1x8xf32>
    %c1_13 = arith.constant 1 : index
    %c0_14 = arith.constant 0 : index
    %49 = vector.load %arg3[%c1_13, %c0_14] : memref<2x8xf32, #tpu.memory_space<vmem>>, vector<1x8xf32>
    tpu.vector_store %arg3[%c1_13, %c0_14], %48 {strides = array<i32>} : memref<2x8xf32, #tpu.memory_space<vmem>>, vector<1x8xf32>,
    return
  }
  func.func @transform_0(%arg0: i32) -> i32 {
    %c0_i32 = arith.constant 0 : i32
    %c0_i32_0 = arith.constant 0 : i32
    return %c0_i32 : i32
  }
  func.func @transform_1(%arg0: i32) -> (i32, i32) {
    %c0_i32 = arith.constant 0 : i32
    %c0_i32_0 = arith.constant 0 : i32
    return %c0_i32, %arg0 : i32, i32
  }
  func.func @transform_2(%arg0: i32) -> (i32, i32) {
    %c0_i32 = arith.constant 0 : i32
    %c0_i32_0 = arith.constant 0 : i32
    return %c0_i32, %arg0 : i32, i32
  }
}

</mosaic_0001>

<bundles_post_ra>
// kernel: tpu_custom_call.1
= control target key start
LH: loop header
LB: loop body
LE: loop exit
PB: predicated region body
PF: predicated region fallthrough
CT: control target
= control target key end

     0   :  { %7 = vsyncpa [#allocation5], 0  ;;  %s195_s0 = inlined_call_operand.hbm [shape: f32[8], index: 0, kind: input, shape index: {}]   ;;  %s196_s1 = inlined_call_operand.hbm [shape: f32[4,8], index: 1, kind: input, shape index: {}]   ;;  %s197_s2 = inlined_call_operand.hbm [shape: f32[2,8], index: 2, kind: output, shape index: {}]  }
   0x1   :  { %8 = vsyncpa [#allocation3], 0 }
   0x2   :  { %9 = vsyncpa [#allocation4], 0  ;;  %s168_s9 = smov [#allocation2]   ;;  %s169_s12 = smov [#allocation6]  }
   0x3   :  { %17 = dma.hbm_to_smem %s195_s0, 16, %s168_s9, [#allocation5]  }
   0x4   :  { %s24_s13 = sshll.u32 %s169_s12, 4  ;;  %s25_s13 = int_to_ptr.vmem [resolvable:$true] %s24_s13 }
   0x5   :  { %s130_s14 = scalar_lea.vmem %s25_s13, 64  ;;  %p135_p1 = scmp.lt.s32.totalorder %s25_s13, %s25_s13 }
   0x6   :  { %p131_p0 = scmp.ne.s32.totalorder %s25_s13, %s130_s14  ;;  %p136_p2 = scmp.lt.s32.totalorder %s130_s14, %s130_s14 }
   0x8   :  { %p137_p3 = por %p136_p2, %p135_p1 }
   0xa   :  { %p138_p4 = pnand %p137_p3, %p131_p0 }
   0xc   :  { %141 = shalt.err (!%p138_p4)
}
   0xd   :  { %27 = dma.hbm_to_vmem [thread:$0]  %s196_s1, 64, %s25_s13, [#allocation3]  }
   0xe   :  { %162 = dma.done.wait [#allocation5], 16  }
   0xf   :  { %163 = vsyncadd [#allocation5], 4294967280 }
  0x10   :  { %164 = dma.done.wait [#allocation3], 64  }
  0x11   :  { %165 = vsyncadd [#allocation3], 4294967232 }
  0x12   :  { %34 = sfence }
  0x13   :  { %s39_s0 = sld [smem:[#allocation2]]  ;;  %v35_v0 = vld [vmem:[#allocation6] sm:$0x1]  ;;  %v36_v1 = vld [vmem:[#allocation6 + $0x1] sm:$0x1]  ;;  %s170_s1 = smov [#allocation7]  }
  0x14   :  { %s100_s17 = sld [smem:[#allocation2 + $0x1]]  ;;  %v37_v2 = vld [vmem:[#allocation6 + $0x2] sm:$0x1]  ;;  %v38_v8 = vld [vmem:[#allocation6 + $0x3] sm:$0x1]  ;;  %s90_s24 = sshll.u32 %s170_s1, 4  ;;  %s91_s24 = int_to_ptr.vmem [resolvable:$true] %s90_s24 }
  0x15   :  { %s101_s18 = sld [smem:[#allocation2 + $0x2]]  ;;  %vm80_vm0 = vcmask 57344   ;;  %s142_s25 = scalar_lea.vmem %s91_s24, 32 }
  0x16   :  { %s102_s19 = sld [smem:[#allocation2 + $0x3]]  ;;  %p143_p5 = scmp.ne.s32.totalorder %s91_s24, %s142_s25 }
  0x17   :  { %s103_s20 = sld [smem:[#allocation2 + $0x4]]  ;;  %p147_p6 = scmp.lt.s32.totalorder %s91_s24, %s91_s24 }
  0x18   :  { %s104_s21 = sld [smem:[#allocation2 + $0x5]]  ;;  %p148_p7 = scmp.lt.s32.totalorder %s142_s25, %s142_s25 }
  0x19   :  { %v40_v3 = vstv %s39_s0  ;;  %s105_s22 = sld [smem:[#allocation2 + $0x6]] }
  0x1a   :  { %v41_v4 = vmul.f32 %v40_v3, %v35_v0  ;;  %v43_v5 = vstv %s100_s17  ;;  %s106_s23 = sld [smem:[#allocation2 + $0x7]]  ;;  %p149_p8 = por %p148_p7, %p147_p6 }
  0x1b   :  { %v44_v6 = vmul.f32 %v43_v5, %v36_v1  ;;  %v47_v7 = vstv %s101_s18 }
  0x1c   :  { %v48_v9 = vmul.f32 %v47_v7, %v37_v2  ;;  %v51_v10 = vstv %s102_s19  ;;  %p150_p9 = pnand %p149_p8, %p143_p5 }
  0x1d   :  { %v45_v11 = vadd.f32 %v44_v6, %v41_v4  ;;  %v55_v12 = vstv %s103_s20  ;;  %v52_v16 = vmul.f32 %v51_v10, %v38_v8 }
  0x1e   :  { %v56_v13 = vmul.f32 %v55_v12, %v35_v0  ;;  %v58_v14 = vstv %s104_s21 }
  0x1f   :  { %v49_v15 = vadd.f32 %v48_v9, %v45_v11  ;;  %v59_v17 = vmul.f32 %v58_v14, %v36_v1  ;;  %v62_v18 = vstv %s105_s22 }
  0x20   :  { %v63_v19 = vmul.f32 %v62_v18, %v37_v2  ;;  %v66_v20 = vstv %s106_s23 }
  0x21   :  { %v60_v21 = vadd.f32 %v59_v17, %v56_v13  ;;  %v67_v22 = vmul.f32 %v66_v20, %v38_v8  ;;  %v53_v23 = vadd.f32 %v52_v16, %v49_v15 }
  0x23   :  { %v64_v24 = vadd.f32 %v63_v19, %v60_v21 }
  0x25   :  { %v68_v25 = vadd.f32 %v67_v22, %v64_v24 }
  0x27   :  { %v69_v26 = vsub.f32 %v53_v23, %v68_v25 }
  0x29   :  { %v71_v27 = vand.u32 2147483647, %v69_v26  ;;  %v70_v32 = vmax.f32 %v69_v26, 0.0 }
  0x2b   :  { %v72_v28 = vsub.f32 0.0, %v71_v27 }
  0x2d   :  { %v73_v29 = vmul.f32 1.442695, %v72_v28 }
  0x2f   :  { %110 = vpow2.f32 %v73_v29 }
  0x3c   :  { %v111_v30 = vpop.eup %110 }
  0x3d   :  { %v75_v31 = vadd.f32 1.0, %v111_v30 }
  0x3f   :  { %112 = vlog2.f32 %v75_v31 }
  0x4c   :  { %v113_v33 = vpop.eup %112 }
  0x4d   :  { %v77_v34 = vmul.f32 0.6931472, %v113_v33 }
  0x4f   :  { %v78_v35 = vadd.f32 %v77_v34, %v70_v32 }
  0x51   :  { %v79_v36 = vsub.f32 %v69_v26, %v78_v35  ;;  %v82_v37 = vsub.f32 0.0, %v78_v35 }
  0x53   :  { %81 = vst.msk [vmem:[#allocation7] sm:$0x1] %vm80_vm0, %v79_v36  ;;  %83 = vst.msk [vmem:[#allocation7 + $0x1] sm:$0x1] %vm80_vm0, %v82_v37 }
  0x54   :  { %153 = shalt.err (!%p150_p9)
}
  0x55   :  { %93 = dma.vmem_to_hbm [thread:$0]  %s91_s24, 32, %s197_s2, [#allocation4]  }
  0x56   :  { %166 = dma.done.wait [#allocation4], 32  }
  0x57   :  { %167 = vsyncadd [#allocation4], 4294967264 }
  0x58   :  { %97 = vsyncpa [#allocation3], 1 }
  0x59   :  { %98 = vsyncpa [#allocation4], 1 }
  0x5a   :  { %99 = vsyncpa [#allocation5], 1 }

</bundles_post_ra>
